<compile_context>
chip_gen: v7x
topology: tpu7x:2x2x1
jax: 0.10.0
libtpu: 0.0.40
codegen_flags: <defaults>
</compile_context>

<pallas_src>
import functools

import jax
import jax.numpy as jnp
from jax.experimental import pallas as pl
from jax.experimental.pallas import tpu as pltpu

EMBD_SIZE = 128
HIDDEN = 4 * EMBD_SIZE
DROPOUT_P = 0.2


def _round_up(a, m):
    return ((a + m - 1) // m) * m


def _ffn_kernel(*refs, dropout_p, apply_dropout):
    if apply_dropout:
        x_ref, w1_ref, b1_ref, w2_ref, b2_ref, bits_ref, o_ref = refs
    else:
        x_ref, w1_ref, b1_ref, w2_ref, b2_ref, o_ref = refs
        bits_ref = None

    # --- Linear 1 + ReLU: bf16 MXU matmul, f32 accumulation, f32 epilogue ---
    x_bf = x_ref[...].astype(jnp.bfloat16)                    # (tm, E)
    h = jnp.dot(x_bf, w1_ref[...],                            # w1 is bf16
                preferred_element_type=jnp.float32)           # (tm, 4E) f32
    h = jnp.maximum(h + b1_ref[...], 0.0)                     # bias + ReLU in f32

    # --- Linear 2 ---
    y = jnp.dot(h.astype(jnp.bfloat16), w2_ref[...],          # w2 is bf16
                preferred_element_type=jnp.float32)           # (tm, E) f32
    y = y + b2_ref[...]

    if apply_dropout:
        # Inverted dropout via integer threshold on precomputed uniform uint32
        # bits: keep iff bits >= round(p * 2^32); survivors scaled by 1/(1-p).
        threshold = jnp.uint32(min(int(round(dropout_p * (2.0 ** 32))), 2 ** 32 - 1))
        scale = jnp.float32(1.0 / (1.0 - dropout_p))
        keep = bits_ref[...] >= threshold
        y = jnp.where(keep, y * scale, 0.0)

    o_ref[...] = y.astype(o_ref.dtype)


def feed_forward(x, w1, b1, w2, b2, *, seed=0, dropout_p=DROPOUT_P,
                 training=True, tm=None):
    """x: (B, T, E) float32. Returns (B, T, E) in x.dtype."""
    B, T, E = x.shape
    H = w1.shape[1]
    N = B * T
    out_dtype = x.dtype

    # Row tile: multiple of 8 (sublane), capped so per-tile VMEM stays small
    # (~few MiB at tm=1024) — safe even for v7x's 64 MiB VMEM.
    if tm is None:
        tm = min(1024, _round_up(N, 8))
    assert tm % 8 == 0, "tm must be a multiple of 8"
    N_pad = _round_up(N, tm)
    grid = (N_pad // tm,)

    x2d = x.reshape(N, E)
    if N_pad != N:
        x2d = jnp.pad(x2d, ((0, N_pad - N), (0, 0)))

    # Weights cast to bf16 once (resident across the whole grid); biases f32.
    w1_bf = w1.astype(jnp.bfloat16)
    w2_bf = w2.astype(jnp.bfloat16)
    b1_2d = b1.reshape(1, H).astype(jnp.float32)
    b2_2d = b2.reshape(1, E).astype(jnp.float32)

    apply_dropout = bool(training) and dropout_p > 0.0

    in_specs = [
        pl.BlockSpec((tm, E), lambda i: (i, 0)),   # x tile
        pl.BlockSpec((E, H), lambda i: (0, 0)),    # W1 (bf16, resident)
        pl.BlockSpec((1, H), lambda i: (0, 0)),    # b1
        pl.BlockSpec((H, E), lambda i: (0, 0)),    # W2 (bf16, resident)
        pl.BlockSpec((1, E), lambda i: (0, 0)),    # b2
    ]
    args = [x2d, w1_bf, b1_2d, w2_bf, b2_2d]

    if apply_dropout:
        # Deterministic per seed and independent of tiling choice.
        bits = jax.random.bits(jax.random.PRNGKey(seed), (N_pad, E),
                               dtype=jnp.uint32)
        in_specs.append(pl.BlockSpec((tm, E), lambda i: (i, 0)))
        args.append(bits)

    flops = 4 * N_pad * E * H  # two GEMMs, 2*M*K*N each
    bytes_accessed = (
        N_pad * E * x2d.dtype.itemsize              # x in
        + N_pad * E * jnp.dtype(out_dtype).itemsize  # out
        + 2 * (E * H) * 2                            # bf16 weights
        + (H + E) * 4                                # biases
        + (N_pad * E * 4 if apply_dropout else 0)    # dropout bits
    )

    kernel = functools.partial(_ffn_kernel, dropout_p=float(dropout_p),
                               apply_dropout=apply_dropout)

    out2d = pl.pallas_call(
        kernel,
        out_shape=jax.ShapeDtypeStruct((N_pad, E), out_dtype),
        grid_spec=pltpu.PrefetchScalarGridSpec(
            num_scalar_prefetch=0,
            grid=grid,
            in_specs=in_specs,
            out_specs=pl.BlockSpec((tm, E), lambda i: (i, 0)),
        ),
        compiler_params=pltpu.CompilerParams(
            dimension_semantics=("parallel",),      # megacore sharding on v7x
            vmem_limit_bytes=32 * 1024 * 1024),     # fits v7x scoped VMEM
        cost_estimate=pl.CostEstimate(flops=flops, transcendentals=0,
                                      bytes_accessed=bytes_accessed),
    )(*args)

    if N_pad != N:
        out2d = out2d[:N]
    return out2d.reshape(B, T, E)


def init_params(key, embd_size=EMBD_SIZE):
    """Deterministic init mirroring nn.Linear default (uniform +/-1/sqrt(fan_in))."""
    h = 4 * embd_size
    k1, k2, k3, k4 = jax.random.split(key, 4)
    lim1 = 1.0 / (embd_size ** 0.5)
    lim2 = 1.0 / (h ** 0.5)
    w1 = jax.random.uniform(k1, (embd_size, h), jnp.float32, -lim1, lim1)
    b1 = jax.random.uniform(k2, (h,), jnp.float32, -lim1, lim1)
    w2 = jax.random.uniform(k3, (h, embd_size), jnp.float32, -lim2, lim2)
    b2 = jax.random.uniform(k4, (embd_size,), jnp.float32, -lim2, lim2)
    return w1, b1, w2, b2


if __name__ == "__main__":
    key = jax.random.PRNGKey(0)
    kx, kp = jax.random.split(key)

    B, T, E = 2, 8, EMBD_SIZE
    x = jax.random.normal(kx, (B, T, E), dtype=jnp.float32)
    w1, b1, w2, b2 = init_params(kp, E)

    # Training mode (dropout active, deterministic seed).
    out = feed_forward(x, w1, b1, w2, b2, seed=0, training=True)
    out = jax.block_until_ready(out)
    assert out.shape == (B, T, E)

    # Eval-mode correctness check against a pure-JAX reference using the same
    # bf16-operand / f32-accumulation matmul scheme.
    x2 = x.reshape(-1, E)
    h_ref = jnp.maximum(
        jnp.dot(x2.astype(jnp.bfloat16), w1.astype(jnp.bfloat16),
                preferred_element_type=jnp.float32) + b1, 0.0)
    ref = jnp.dot(h_ref.astype(jnp.bfloat16), w2.astype(jnp.bfloat16),
                  preferred_element_type=jnp.float32) + b2
    ker = feed_forward(x, w1, b1, w2, b2, training=False).reshape(-1, E)
    assert jnp.allclose(ker, ref, atol=2e-2, rtol=2e-2), \
        float(jnp.max(jnp.abs(ker - ref)))

    # Dropout sanity: roughly 20% of outputs zeroed (loose bound, 2048 samples).
    zero_frac = float(jnp.mean((out == 0.0).astype(jnp.float32)))
    assert 0.08 < zero_frac < 0.35, zero_frac

    print("KERNEL_OK")
</pallas_src>

<mosaic_0001>
module attributes {stable_mosaic.version = 11 : i64} {
  func.func @_ffn_kernel(%arg0: i32, %arg1: memref<16x128xf32, #tpu.memory_space<vmem>>, %arg2: memref<128x512xbf16, #tpu.memory_space<vmem>>, %arg3: memref<1x512xf32, #tpu.memory_space<vmem>>, %arg4: memref<512x128xbf16, #tpu.memory_space<vmem>>, %arg5: memref<1x128xf32, #tpu.memory_space<vmem>>, %arg6: memref<16x128xi32, #tpu.memory_space<vmem>>, %arg7: memref<16x128xf32, #tpu.memory_space<vmem>>) attributes {dimension_semantics = [#tpu.dimension_semantics<parallel>], iteration_bounds = array<i64: 1>, scalar_prefetch = 0 : i64, scratch_operands = 0 : i64, tpu.core_type = #tpu.core_type<tc>, window_params = [{transform_indices = @transform_0, window_bounds = array<i64: 16, 128>}, {pipeline_mode = #tpu.pipeline_mode<synchronous>, transform_indices = @transform_1, window_bounds = array<i64: 128, 512>}, {pipeline_mode = #tpu.pipeline_mode<synchronous>, transform_indices = @transform_2, window_bounds = array<i64: 1, 512>}, {pipeline_mode = #tpu.pipeline_mode<synchronous>, transform_indices = @transform_3, window_bounds = array<i64: 512, 128>}, {pipeline_mode = #tpu.pipeline_mode<synchronous>, transform_indices = @transform_4, window_bounds = array<i64: 1, 128>}, {transform_indices = @transform_5, window_bounds = array<i64: 16, 128>}, {transform_indices = @transform_6, window_bounds = array<i64: 16, 128>}]} {
    %c0 = arith.constant 0 : index
    %c0_0 = arith.constant 0 : index
    %0 = vector.load %arg1[%c0, %c0_0] : memref<16x128xf32, #tpu.memory_space<vmem>>, vector<16x128xf32>
    %1 = arith.truncf %0 : vector<16x128xf32> to vector<16x128xbf16>
    %c0_1 = arith.constant 0 : index
    %c0_2 = arith.constant 0 : index
    %2 = vector.load %arg2[%c0_1, %c0_2] : memref<128x512xbf16, #tpu.memory_space<vmem>>, vector<128x512xbf16>
    %cst = arith.constant dense<0.000000e+00> : vector<16x512xf32>
    %3 = tpu.matmul %1, %2, %cst {dimension_numbers = #tpu.dot_dimension_numbers<[1], [0], [0], [1], [0, 0, 1, 1], [], []>} : vector<16x128xbf16>, vector<128x512xbf16>, vector<16x512xf32> -> vector<16x512xf32>
    %c0_3 = arith.constant 0 : index
    %c0_4 = arith.constant 0 : index
    %4 = vector.load %arg3[%c0_3, %c0_4] : memref<1x512xf32, #tpu.memory_space<vmem>>, vector<1x512xf32>
    %5 = vector.broadcast %4 : vector<1x512xf32> to vector<16x512xf32>
    %6 = arith.addf %3, %5 : vector<16x512xf32>
    %cst_5 = arith.constant 0.000000e+00 : f32
    %7 = vector.broadcast %cst_5 : f32 to vector<16x512xf32>
    %8 = arith.maximumf %6, %7 : vector<16x512xf32>
    %9 = arith.truncf %8 : vector<16x512xf32> to vector<16x512xbf16>
    %c0_6 = arith.constant 0 : index
    %c0_7 = arith.constant 0 : index
    %10 = vector.load %arg4[%c0_6, %c0_7] : memref<512x128xbf16, #tpu.memory_space<vmem>>, vector<512x128xbf16>
    %cst_8 = arith.constant dense<0.000000e+00> : vector<16x128xf32>
    %11 = tpu.matmul %9, %10, %cst_8 {dimension_numbers = #tpu.dot_dimension_numbers<[1], [0], [0], [1], [0, 0, 1, 1], [], []>} : vector<16x512xbf16>, vector<512x128xbf16>, vector<16x128xf32> -> vector<16x128xf32>
    %c0_9 = arith.constant 0 : index
    %c0_10 = arith.constant 0 : index
    %12 = vector.load %arg5[%c0_9, %c0_10] : memref<1x128xf32, #tpu.memory_space<vmem>>, vector<1x128xf32>
    %13 = vector.broadcast %12 : vector<1x128xf32> to vector<16x128xf32>
    %14 = arith.addf %11, %13 : vector<16x128xf32>
    %c0_11 = arith.constant 0 : index
    %c0_12 = arith.constant 0 : index
    %15 = vector.load %arg6[%c0_11, %c0_12] : memref<16x128xi32, #tpu.memory_space<vmem>>, vector<16x128xi32>
    %c858993459_i32 = arith.constant 858993459 : i32
    %16 = vector.broadcast %c858993459_i32 : i32 to vector<16x128xi32>
    %17 = arith.cmpi uge, %15, %16 : vector<16x128xi32>
    %cst_13 = arith.constant 1.250000e+00 : f32
    %18 = vector.broadcast %cst_13 : f32 to vector<16x128xf32>
    %19 = arith.mulf %14, %18 : vector<16x128xf32>
    %cst_14 = arith.constant 0.000000e+00 : f32
    %20 = vector.broadcast %cst_14 : f32 to vector<16x128xf32>
    %21 = arith.select %17, %19, %20 : vector<16x128xi1>, vector<16x128xf32>
    %c0_15 = arith.constant 0 : index
    %c0_16 = arith.constant 0 : index
    %22 = vector.load %arg7[%c0_15, %c0_16] : memref<16x128xf32, #tpu.memory_space<vmem>>, vector<16x128xf32>
    tpu.vector_store %arg7[%c0_15, %c0_16], %21 {strides = array<i32>} : memref<16x128xf32, #tpu.memory_space<vmem>>, vector<16x128xf32>,
    return
  }
  func.func @transform_0(%arg0: i32) -> (i32, i32) {
    %c0_i32 = arith.constant 0 : i32
    %c0_i32_0 = arith.constant 0 : i32
    return %arg0, %c0_i32 : i32, i32
  }
  func.func @transform_1(%arg0: i32) -> (i32, i32) {
    %c0_i32 = arith.constant 0 : i32
    %c0_i32_0 = arith.constant 0 : i32
    %c0_i32_1 = arith.constant 0 : i32
    return %c0_i32, %c0_i32_0 : i32, i32
  }
  func.func @transform_2(%arg0: i32) -> (i32, i32) {
    %c0_i32 = arith.constant 0 : i32
    %c0_i32_0 = arith.constant 0 : i32
    %c0_i32_1 = arith.constant 0 : i32
    return %c0_i32, %c0_i32_0 : i32, i32
  }
  func.func @transform_3(%arg0: i32) -> (i32, i32) {
    %c0_i32 = arith.constant 0 : i32
    %c0_i32_0 = arith.constant 0 : i32
    %c0_i32_1 = arith.constant 0 : i32
    return %c0_i32, %c0_i32_0 : i32, i32
  }
  func.func @transform_4(%arg0: i32) -> (i32, i32) {
    %c0_i32 = arith.constant 0 : i32
    %c0_i32_0 = arith.constant 0 : i32
    %c0_i32_1 = arith.constant 0 : i32
    return %c0_i32, %c0_i32_0 : i32, i32
  }
  func.func @transform_5(%arg0: i32) -> (i32, i32) {
    %c0_i32 = arith.constant 0 : i32
    %c0_i32_0 = arith.constant 0 : i32
    return %arg0, %c0_i32 : i32, i32
  }
  func.func @transform_6(%arg0: i32) -> (i32, i32) {
    %c0_i32 = arith.constant 0 : i32
    %c0_i32_0 = arith.constant 0 : i32
    return %arg0, %c0_i32 : i32, i32
  }
}

</mosaic_0001>

<bundles_post_ra>
// kernel: tpu_custom_call.1
= control target key start
LH: loop header
LB: loop body
LE: loop exit
PB: predicated region body
PF: predicated region fallthrough
CT: control target
= control target key end

     0   :  { %11 = vsyncpa [#allocation3], 0  ;;  %s1215_s0 = inlined_call_operand.hbm [shape: f32[16,128], index: 0, kind: input, shape index: {}]   ;;  %s1216_s1 = inlined_call_operand.hbm [shape: bf16[128,512], index: 1, kind: input, shape index: {}]   ;;  %s1217_s2 = inlined_call_operand.hbm [shape: f32[1,512], index: 2, kind: input, shape index: {}]   ;;  %s1218_s3 = inlined_call_operand.hbm [shape: bf16[512,128], index: 3, kind: input, shape index: {}]   ;;  %s1219_s4 = inlined_call_operand.vmem [shape: f32[1,128], index: 4, kind: input, shape index: {}]   ;;  %s1220_s5 = inlined_call_operand.vmem [shape: u32[16,128], index: 5, kind: input, shape index: {}]   ;;  %s1221_s6 = inlined_call_operand.hbm [shape: f32[16,128], index: 6, kind: output, shape index: {}]  }
   0x1   :  { %12 = vsyncpa [#allocation6], 0 }
   0x2   :  { %13 = vsyncpa [#allocation9], 0 }
   0x3   :  { %14 = vsyncpa [#allocation4], 0  ;;  %s1086_s21 = smov [#allocation5]   ;;  %s968_s25 = scalar_lea.hbm %s1216_s1, 4096 }
   0x4   :  { %s32_s22 = sshll.u32 %s1086_s21, 4  ;;  %p969_p0 = scmp.ne.s32.totalorder %s1216_s1, %s968_s25  ;;  %s33_s22 = int_to_ptr.vmem [resolvable:$true] %s32_s22 }
   0x5   :  { %p972_p1 = scmp.lt.u32.totalorder %s968_s25, %s1216_s1 }
   0x7   :  { %p974_p2 = pnand %p972_p1, %p969_p0 }
   0x9   :  { %977 = shalt.err (!%p974_p2)
}
   0xa   :  { %s978_s30 = scalar_lea.vmem %s33_s22, 4096  ;;  %p983_p4 = scmp.lt.s32.totalorder %s33_s22, %s33_s22 }
   0xb   :  { %p979_p3 = scmp.ne.s32.totalorder %s33_s22, %s978_s30  ;;  %p984_p5 = scmp.lt.s32.totalorder %s978_s30, %s978_s30 }
   0xd   :  { %p985_p6 = por %p984_p5, %p983_p4 }
   0xf   :  { %p986_p7 = pnand %p985_p6, %p979_p3 }
  0x11   :  { %989 = shalt.err (!%p986_p7)
}
  0x12   :  { %s1087_s7 = smov 256   ;;  %s1088_s8 = smov 16  }
  0x13   :  { %38 = dma.hbm_to_vmem [thread:$0]  %s1216_s1, 4096, %s33_s22, [#allocation6], %s1087_s7, %s1087_s7, %s1088_s8  }
  0x14   :  { %s1089_s11 = smov [#allocation2]   ;;  %s990_s15 = scalar_lea.hbm %s1215_s0, 256 }
  0x15   :  { %s20_s12 = sshll.u32 %s1089_s11, 4  ;;  %p991_p8 = scmp.ne.s32.totalorder %s1215_s0, %s990_s15  ;;  %s21_s12 = int_to_ptr.vmem [resolvable:$true] %s20_s12 }
  0x16   :  { %p994_p9 = scmp.lt.u32.totalorder %s990_s15, %s1215_s0 }
  0x18   :  { %p996_p10 = pnand %p994_p9, %p991_p8 }
  0x1a   :  { %999 = shalt.err (!%p996_p10)
}
  0x1b   :  { %s1000_s20 = scalar_lea.vmem %s21_s12, 256  ;;  %p1005_p12 = scmp.lt.s32.totalorder %s21_s12, %s21_s12 }
  0x1c   :  { %p1001_p11 = scmp.ne.s32.totalorder %s21_s12, %s1000_s20  ;;  %p1006_p13 = scmp.lt.s32.totalorder %s1000_s20, %s1000_s20 }
  0x1e   :  { %p1007_p0 = por %p1006_p13, %p1005_p12 }
  0x20   :  { %p1008_p1 = pnand %p1007_p0, %p1001_p11 }
  0x22   :  { %1011 = shalt.err (!%p1008_p1)
}
  0x23   :  { %s1090_s1 = smov 128   ;;  %s1091_s21 = smov 8  }
  0x24   :  { %26 = dma.hbm_to_vmem [thread:$0]  %s1215_s0, 256, %s21_s12, [#allocation3], %s1090_s1, %s1090_s1, %s1091_s21  }
  0x25   :  { %s1092_s24 = smov [#allocation7]   ;;  %s1093_s26 = smov [#allocation8]  }
  0x26   :  { %s45_s25 = sshll.u32 %s1092_s24, 4  ;;  %s54_s27 = sshll.u32 %s1093_s26, 4  ;;  %s46_s25 = int_to_ptr.vmem [resolvable:$true] %s45_s25  ;;  %s1160_s27 = int_to_ptr.vmem [resolvable:$true] %s54_s27 }
  0x27   :  { %s1012_s30 = scalar_lea.hbm %s1217_s2, 64 }
  0x28   :  { %p1013_p2 = scmp.ne.s32.totalorder %s1217_s2, %s1012_s30  ;;  %p1016_p3 = scmp.lt.u32.totalorder %s1012_s30, %s1217_s2 }
  0x2a   :  { %p1018_p4 = pnand %p1016_p3, %p1013_p2 }
  0x2c   :  { %1021 = shalt.err (!%p1018_p4)
}
  0x2d   :  { %s1022_s0 = scalar_lea.vmem %s46_s25, 64  ;;  %p1027_p6 = scmp.lt.s32.totalorder %s46_s25, %s46_s25 }
  0x2e   :  { %p1023_p5 = scmp.ne.s32.totalorder %s46_s25, %s1022_s0  ;;  %p1028_p7 = scmp.lt.s32.totalorder %s1022_s0, %s1022_s0 }
  0x30   :  { %p1029_p8 = por %p1028_p7, %p1027_p6 }
  0x32   :  { %p1030_p9 = pnand %p1029_p8, %p1023_p5 }
  0x34   :  { %1033 = shalt.err (!%p1030_p9)
}
  0x35   :  { %48 = dma.hbm_to_vmem [thread:$0]  %s1217_s2, 64, %s46_s25, [#allocation6]  }
  0x36   :  { %s1034_s15 = scalar_lea.hbm %s1218_s3, 4096 }
  0x37   :  { %p1035_p10 = scmp.ne.s32.totalorder %s1218_s3, %s1034_s15  ;;  %p1038_p11 = scmp.lt.u32.totalorder %s1034_s15, %s1218_s3 }
  0x39   :  { %p1040_p12 = pnand %p1038_p11, %p1035_p10 }
  0x3b   :  { %1043 = shalt.err (!%p1040_p12)
}
  0x3c   :  { %s1044_s20 = scalar_lea.vmem %s1160_s27, 4096  ;;  %p1049_p0 = scmp.lt.s32.totalorder %s1160_s27, %s1160_s27 }
  0x3d   :  { %p1045_p13 = scmp.ne.s32.totalorder %s1160_s27, %s1044_s20  ;;  %p1050_p1 = scmp.lt.s32.totalorder %s1044_s20, %s1044_s20 }
  0x3f   :  { %p1051_p2 = por %p1050_p1, %p1049_p0 }
  0x41   :  { %p1052_p3 = pnand %p1051_p2, %p1045_p13 }
  0x43   :  { %1055 = shalt.err (!%p1052_p3)
}
  0x44   :  { %s1094_s2 = smov 64   ;;  %s1095_s22 = smov 4  }
  0x45   :  { %60 = dma.hbm_to_vmem [thread:$0]  %s1218_s3, 4096, %s1160_s27, [#allocation9], %s1094_s2, %s1094_s2, %s1095_s22  }
  0x46   :  { %1078 = dma.done.wait [#allocation3], 256  }
  0x47   :  { %1079 = vsyncadd [#allocation3], 4294967040 }
  0x48   :  { %1080 = dma.done.wait [#allocation6], 4160  }
  0x49   :  { %1081 = vsyncadd [#allocation6], 4294963136 }
  0x4a   :  { %1082 = dma.done.wait [#allocation9], 4096  }
  0x4b   :  { %1083 = vsyncadd [#allocation9], 4294963200  ;;  %v1096_v0 = vmov 0   ;;  %v888_v1 = vld [vmem:[#allocation5 + $0x4] ss:$16 sps:$4 sm:$0xff]   ;;  %v79_v34 = vld [vmem:[#allocation2 + $0x8] sm:$0xff] }
  0x4c   :  { %327 = vmatprep.mubr.bf16.mxu0 %v1096_v0  ;;  %370 = vmatprep.mubr.bf16.mxu1 %v1096_v0  ;;  %v890_v2 = vld [vmem:[#allocation5 + $0xc] ss:$16 sps:$4 sm:$0xff]   ;;  %v892_v3 = vld [vmem:[#allocation5] ss:$16 sps:$4 sm:$0xff]   ;;  %v893_v4 = vld [vmem:[#allocation5 + $0x8] ss:$16 sps:$4 sm:$0xff]  }
  0x4d   :  { %295 = vmatprep.subr.bf16.mxu0 %v888_v1  ;;  %338 = vmatprep.subr.bf16.mxu1 %v890_v2  ;;  %v894_v5 = vld [vmem:[#allocation5 + $0x24] ss:$16 sps:$4 sm:$0xff]   ;;  %v896_v6 = vld [vmem:[#allocation5 + $0x2c] ss:$16 sps:$4 sm:$0xff]   ;;  %v898_v7 = vld [vmem:[#allocation5 + $0x20] ss:$16 sps:$4 sm:$0xff]  }
  0x4e   :  { %296 = vmatpush1.bf16.msra.mxu0 %v892_v3  ;;  %339 = vmatpush1.bf16.msra.mxu1 %v893_v4  ;;  %v899_v8 = vld [vmem:[#allocation5 + $0x28] ss:$16 sps:$4 sm:$0xff]   ;;  %v900_v9 = vld [vmem:[#allocation5 + $0x44] ss:$16 sps:$4 sm:$0xff]   ;;  %v902_v10 = vld [vmem:[#allocation5 + $0x4c] ss:$16 sps:$4 sm:$0xff]   ;;  %v115_v4 = vlaneseq }
  0x4f   :  { %297 = vmatprep.subr.bf16.mxu0 %v894_v5  ;;  %340 = vmatprep.subr.bf16.mxu1 %v896_v6  ;;  %v904_v11 = vld [vmem:[#allocation5 + $0x40] ss:$16 sps:$4 sm:$0xff]   ;;  %v905_v12 = vld [vmem:[#allocation5 + $0x48] ss:$16 sps:$4 sm:$0xff]   ;;  %v906_v13 = vld [vmem:[#allocation5 + $0x64] ss:$16 sps:$4 sm:$0xff]  }
  0x50   :  { %v908_v14 = vld [vmem:[#allocation5 + $0x6c] ss:$16 sps:$4 sm:$0xff]   ;;  %v910_v15 = vld [vmem:[#allocation5 + $0x60] ss:$16 sps:$4 sm:$0xff]   ;;  %v911_v16 = vld [vmem:[#allocation5 + $0x68] ss:$16 sps:$4 sm:$0xff]  }
  0x51   :  { %v912_v17 = vld [vmem:[#allocation5 + $0x84] ss:$16 sps:$4 sm:$0xff]   ;;  %v914_v18 = vld [vmem:[#allocation5 + $0x8c] ss:$16 sps:$4 sm:$0xff]   ;;  %v916_v19 = vld [vmem:[#allocation5 + $0x80] ss:$16 sps:$4 sm:$0xff]  }
  0x52   :  { %298 = vmatpush1.bf16.msra.mxu0 %v898_v7  ;;  %341 = vmatpush1.bf16.msra.mxu1 %v899_v8  ;;  %v917_v20 = vld [vmem:[#allocation5 + $0x88] ss:$16 sps:$4 sm:$0xff]   ;;  %v918_v21 = vld [vmem:[#allocation5 + $0xa4] ss:$16 sps:$4 sm:$0xff]   ;;  %v920_v22 = vld [vmem:[#allocation5 + $0xac] ss:$16 sps:$4 sm:$0xff]  }
  0x53   :  { %299 = vmatprep.subr.bf16.mxu0 %v900_v9  ;;  %342 = vmatprep.subr.bf16.mxu1 %v902_v10  ;;  %v922_v23 = vld [vmem:[#allocation5 + $0xa0] ss:$16 sps:$4 sm:$0xff]   ;;  %v923_v24 = vld [vmem:[#allocation5 + $0xa8] ss:$16 sps:$4 sm:$0xff]   ;;  %v924_v25 = vld [vmem:[#allocation5 + $0xc4] ss:$16 sps:$4 sm:$0xff]  }
  0x54   :  { %v926_v26 = vld [vmem:[#allocation5 + $0xcc] ss:$16 sps:$4 sm:$0xff]   ;;  %v928_v27 = vld [vmem:[#allocation5 + $0xc0] ss:$16 sps:$4 sm:$0xff]   ;;  %v929_v28 = vld [vmem:[#allocation5 + $0xc8] ss:$16 sps:$4 sm:$0xff]  }
  0x55   :  { %v930_v29 = vld [vmem:[#allocation5 + $0xe4] ss:$16 sps:$4 sm:$0xff]   ;;  %v932_v30 = vld [vmem:[#allocation5 + $0xec] ss:$16 sps:$4 sm:$0xff]   ;;  %v934_v31 = vld [vmem:[#allocation5 + $0xe0] ss:$16 sps:$4 sm:$0xff]  }
  0x56   :  { %300 = vmatpush1.bf16.msra.mxu0 %v904_v11  ;;  %343 = vmatpush1.bf16.msra.mxu1 %v905_v12  ;;  %v935_v32 = vld [vmem:[#allocation5 + $0xe8] ss:$16 sps:$4 sm:$0xff]   ;;  %v78_v33 = vld [vmem:[#allocation2] sm:$0xff]  ;;  %v948_v48 = vld [vmem:[#allocation8 + $0x58] sm:$0xff]   ;;  %v116_v5 = vshrl.u32 %v115_v4, 7 }
  0x57   :  { %301 = vmatprep.subr.bf16.mxu0 %v906_v13  ;;  %344 = vmatprep.subr.bf16.mxu1 %v908_v14  ;;  %v936_v35 = vld [vmem:[#allocation8 + $0x40] sm:$0xff]   ;;  %v80_v38 = vpack.c.bf16 %v79_v34, %v78_v33  ;;  %v940_v40 = vld [vmem:[#allocation8 + $0x48] sm:$0xff]   ;;  %v944_v44 = vld [vmem:[#allocation8 + $0x50] sm:$0xff]  }
  0x58   :  { %v937_v36 = vld [vmem:[#allocation8 + $0xc0] sm:$0xff]   ;;  %v941_v41 = vld [vmem:[#allocation8 + $0xc8] sm:$0xff]   ;;  %v945_v45 = vld [vmem:[#allocation8 + $0xd0] sm:$0xff]   ;;  %v117_v6 = vsub.s32 0, %v116_v5  ;;  %v125_v7 = vsub.s32 2, %v116_v5  ;;  %v121_v9 = vsub.s32 1, %v116_v5 }
  0x59   :  { %v938_v37 = vld [vmem:[#allocation8] sm:$0xff]   ;;  %v942_v42 = vld [vmem:[#allocation8 + $0x8] sm:$0xff]   ;;  %v946_v46 = vld [vmem:[#allocation8 + $0x10] sm:$0xff]   ;;  %v129_v10 = vsub.s32 3, %v116_v5 }
  0x5a   :  { %302 = vmatpush1.bf16.msra.mxu0 %v910_v15  ;;  %345 = vmatpush1.bf16.msra.mxu1 %v911_v16  ;;  %v939_v39 = vld [vmem:[#allocation8 + $0x80] sm:$0xff]   ;;  %v943_v43 = vld [vmem:[#allocation8 + $0x88] sm:$0xff]   ;;  %v947_v47 = vld [vmem:[#allocation8 + $0x90] sm:$0xff]  }
  0x5b   :  { %303 = vmatprep.subr.bf16.mxu0 %v912_v17  ;;  %346 = vmatprep.subr.bf16.mxu1 %v914_v18  ;;  %v949_v49 = vld [vmem:[#allocation8 + $0xd8] sm:$0xff]   ;;  %v952_v52 = vld [vmem:[#allocation8 + $0x60] sm:$0xff]   ;;  %v956_v56 = vld [vmem:[#allocation8 + $0x68] sm:$0xff]  }
  0x5c   :  { %v950_v50 = vld [vmem:[#allocation8 + $0x18] sm:$0xff]   ;;  %v953_v53 = vld [vmem:[#allocation8 + $0xe0] sm:$0xff]   ;;  %v957_v57 = vld [vmem:[#allocation8 + $0xe8] sm:$0xff]  }
  0x5d   :  { %v951_v51 = vld [vmem:[#allocation8 + $0x98] sm:$0xff]   ;;  %v954_v54 = vld [vmem:[#allocation8 + $0x20] sm:$0xff]   ;;  %v958_v58 = vld [vmem:[#allocation8 + $0x28] sm:$0xff]  }
  0x5e   :  { %304 = vmatpush1.bf16.msra.mxu0 %v916_v19  ;;  %347 = vmatpush1.bf16.msra.mxu1 %v917_v20  ;;  %v955_v55 = vld [vmem:[#allocation8 + $0xa0] sm:$0xff]   ;;  %v959_v59 = vld [vmem:[#allocation8 + $0xa8] sm:$0xff]   ;;  %v960_v60 = vld [vmem:[#allocation8 + $0x70] sm:$0xff]  }
  0x5f   :  { %305 = vmatprep.subr.bf16.mxu0 %v918_v21  ;;  %348 = vmatprep.subr.bf16.mxu1 %v920_v22  ;;  %v961_v61 = vld [vmem:[#allocation8 + $0xf0] sm:$0xff]   ;;  %v964_v0 = vld [vmem:[#allocation8 + $0x78] sm:$0xff]  }
  0x60   :  { %v962_v62 = vld [vmem:[#allocation8 + $0x30] sm:$0xff]   ;;  %v965_v1 = vld [vmem:[#allocation8 + $0xf8] sm:$0xff]  }
  0x61   :  { %v963_v63 = vld [vmem:[#allocation8 + $0xb0] sm:$0xff]   ;;  %v966_v2 = vld [vmem:[#allocation8 + $0x38] sm:$0xff]  }
  0x62   :  { %306 = vmatpush1.bf16.msra.mxu0 %v922_v23  ;;  %349 = vmatpush1.bf16.msra.mxu1 %v923_v24  ;;  %v967_v3 = vld [vmem:[#allocation8 + $0xb8] sm:$0xff]  }
  0x63   :  { %307 = vmatprep.subr.bf16.mxu0 %v924_v25  ;;  %350 = vmatprep.subr.bf16.mxu1 %v926_v26  ;;  %v113_v8 = vld [vmem:[#allocation7] sm:$0xf] }
  0x64   :  { %v118_v11 = vrot.slane %v113_v8, %v117_v6  ;;  %v126_v12 = vrot.slane %v113_v8, %v125_v7  ;;  %v122_v13 = vrot.slane %v113_v8, %v121_v9  ;;  %v130_v14 = vrot.slane %v113_v8, %v129_v10 }
  0x66   :  { %308 = vmatpush1.bf16.msra.mxu0 %v928_v27  ;;  %351 = vmatpush1.bf16.msra.mxu1 %v929_v28 }
  0x67   :  { %309 = vmatprep.subr.bf16.mxu0 %v930_v29  ;;  %352 = vmatprep.subr.bf16.mxu1 %v932_v30 }
  0x6a   :  { %310 = vmatpush1.bf16.msra.mxu0 %v934_v31  ;;  %353 = vmatpush1.bf16.msra.mxu1 %v935_v32 }
  0x6b   :  { %832 = vmatprep.subr.bf16.mxu0 %v936_v35  ;;  %854 = vmatprep.subr.bf16.mxu1 %v937_v36 }
  0x6d   :  { %328 = vmatmul.mubr.bf16.vlgmr.msra.gmra.mrb[0].mxu0 %v80_v38  ;;  %371 = vmatmul.mubr.bf16.vlgmr.msra.gmra.mrb[0].mxu1 %v80_v38 }
  0x6e   :  { %833 = vmatpush3.bf16.msra.mxu0 %v938_v37  ;;  %855 = vmatpush3.bf16.msra.mxu1 %v939_v39 }
  0x6f   :  { %834 = vmatprep.subr.bf16.mxu0 %v940_v40  ;;  %856 = vmatprep.subr.bf16.mxu1 %v941_v41 }
  0x72   :  { %835 = vmatpush3.bf16.msra.mxu0 %v942_v42  ;;  %857 = vmatpush3.bf16.msra.mxu1 %v943_v43 }
  0x73   :  { %836 = vmatprep.subr.bf16.mxu0 %v944_v44  ;;  %858 = vmatprep.subr.bf16.mxu1 %v945_v45  ;;  %v799_v45 = vld [vmem:[%s1219_s4] ss:$0 sm:$0xff]  ;;  %s1097_s4 = smov [#allocation10]  }
  0x74   :  { %s753_s30 = sshll.u32 %s1097_s4, 4  ;;  %s754_s30 = int_to_ptr.vmem [resolvable:$true] %s753_s30 }
  0x75   :  { %s1056_s7 = scalar_lea.vmem %s754_s30, 256  ;;  %p1061_p5 = scmp.lt.s32.totalorder %s754_s30, %s754_s30 }
  0x76   :  { %837 = vmatpush3.bf16.msra.mxu0 %v946_v46  ;;  %859 = vmatpush3.bf16.msra.mxu1 %v947_v47  ;;  %p1057_p4 = scmp.ne.s32.totalorder %s754_s30, %s1056_s7  ;;  %p1062_p6 = scmp.lt.s32.totalorder %s1056_s7, %s1056_s7 }
  0x77   :  { %838 = vmatprep.subr.bf16.mxu0 %v948_v48  ;;  %860 = vmatprep.subr.bf16.mxu1 %v949_v49 }
  0x78   :  { %p1063_p7 = por %p1062_p6, %p1061_p5 }
  0x7a   :  { %839 = vmatpush3.bf16.msra.mxu0 %v950_v50  ;;  %861 = vmatpush3.bf16.msra.mxu1 %v951_v51  ;;  %p1064_p8 = pnand %p1063_p7, %p1057_p4 }
  0x7b   :  { %840 = vmatprep.subr.bf16.mxu0 %v952_v52  ;;  %862 = vmatprep.subr.bf16.mxu1 %v953_v53 }
  0x7e   :  { %841 = vmatpush3.bf16.msra.mxu0 %v954_v54  ;;  %863 = vmatpush3.bf16.msra.mxu1 %v955_v55 }
  0x7f   :  { %842 = vmatprep.subr.bf16.mxu0 %v956_v56  ;;  %864 = vmatprep.subr.bf16.mxu1 %v957_v57  ;;  %v738_v57 = vld [vmem:[%s1220_s5] sm:$0xff] }
  0x80   :  { %vm740_vm0 = vcmp.ge.u32.totalorder %v738_v57, 858993459 }
  0x82   :  { %843 = vmatpush3.bf16.msra.mxu0 %v958_v58  ;;  %865 = vmatpush3.bf16.msra.mxu1 %v959_v59 }
  0x83   :  { %844 = vmatprep.subr.bf16.mxu0 %v960_v60  ;;  %866 = vmatprep.subr.bf16.mxu1 %v961_v61  ;;  %v739_v60 = vld [vmem:[%s1220_s5 + $0x8] sm:$0xff] }
  0x84   :  { %vm741_vm1 = vcmp.ge.u32.totalorder %v739_v60, 858993459 }
  0x86   :  { %845 = vmatpush3.bf16.msra.mxu0 %v962_v62  ;;  %867 = vmatpush3.bf16.msra.mxu1 %v963_v63 }
  0x87   :  { %846 = vmatprep.subr.bf16.mxu0 %v964_v0  ;;  %868 = vmatprep.subr.bf16.mxu1 %v965_v1 }
  0x8a   :  { %847 = vmatpush3.bf16.msra.mxu0 %v966_v2  ;;  %869 = vmatpush3.bf16.msra.mxu1 %v967_v3 }
 0x140   :  { %v329_v15 = vpop.f32.mrb[0].mxu0  ;;  %v372_v16 = vpop.f32.mrb[0].mxu1 }
 0x141   :  { %v330_v17 = vadd.f32 %v329_v15, %v118_v11  ;;  %v373_v18 = vadd.f32 %v372_v16, %v126_v12  ;;  %v331_v19 = vpop.f32.mrb[1].mxu0  ;;  %v374_v20 = vpop.f32.mrb[1].mxu1 }
 0x142   :  { %v332_v21 = vadd.f32 %v331_v19, %v122_v13  ;;  %v375_v22 = vadd.f32 %v374_v20, %v130_v14  ;;  %v333_v23 = vpop.f32.mrb[2].mxu0  ;;  %v376_v24 = vpop.f32.mrb[2].mxu1 }
 0x143   :  { %v383_v25 = vmax.f32 %v373_v18, 0.0  ;;  %v334_v26 = vadd.f32 %v333_v23, %v118_v11  ;;  %v377_v27 = vadd.f32 %v376_v24, %v126_v12  ;;  %v335_v28 = vpop.f32.mrb[3].mxu0  ;;  %v378_v29 = vpop.f32.mrb[3].mxu1  ;;  %v381_v33 = vmax.f32 %v330_v17, 0.0 }
 0x144   :  { %v384_v30 = vmax.f32 %v375_v22, 0.0  ;;  %v336_v31 = vadd.f32 %v335_v28, %v122_v13  ;;  %v379_v32 = vadd.f32 %v378_v29, %v130_v14  ;;  %v382_v36 = vmax.f32 %v332_v21, 0.0 }
 0x145   :  { %v385_v34 = vmax.f32 %v334_v26, 0.0  ;;  %v387_v35 = vmax.f32 %v377_v27, 0.0 }
 0x146   :  { %v386_v37 = vmax.f32 %v336_v31, 0.0  ;;  %v388_v38 = vmax.f32 %v379_v32, 0.0 }
 0x147   :  { %v389_v39 = vpack.c.bf16 %v385_v34, %v381_v33  ;;  %v391_v40 = vpack.c.bf16 %v387_v35, %v383_v25 }
 0x148   :  { %v390_v41 = vpack.c.bf16 %v386_v37, %v382_v36  ;;  %v392_v42 = vpack.c.bf16 %v388_v38, %v384_v30 }
 0x14a   :  { %688 = vmatprep.mubr.bf16.mxu0 %v390_v41  ;;  %729 = vmatprep.mubr.bf16.mxu1 %v392_v42 }
 0x14b   :  { %689 = vmatmul.mubr.bf16.vlgmr.msra.gmra.mrb[4].mxu0 %v389_v39  ;;  %730 = vmatmul.mubr.bf16.vlgmr.msra.gmra.mrb[4].mxu1 %v391_v40 }
 0x21e   :  { %v848_v43 = vpop.f32.mrb[4].mxu0  ;;  %v870_v44 = vpop.f32.mrb[4].mxu1 }
 0x21f   :  { %v849_v46 = vpop.f32.mrb[5].mxu0  ;;  %v871_v47 = vpop.f32.mrb[5].mxu1 }
 0x220   :  { %v850_v48 = vadd.f32 %v849_v46, %v848_v43  ;;  %v872_v49 = vadd.f32 %v871_v47, %v870_v44  ;;  %v851_v50 = vpop.f32.mrb[6].mxu0  ;;  %v873_v51 = vpop.f32.mrb[6].mxu1 }
 0x221   :  { %v852_v52 = vpop.f32.mrb[7].mxu0  ;;  %v874_v53 = vpop.f32.mrb[7].mxu1 }
 0x222   :  { %v691_v54 = vadd.f32 %v850_v48, %v799_v45  ;;  %v853_v55 = vadd.f32 %v852_v52, %v851_v50  ;;  %v875_v56 = vadd.f32 %v874_v53, %v873_v51 }
 0x224   :  { %v732_v58 = vadd.f32 %v872_v49, %v691_v54  ;;  %v694_v59 = vadd.f32 %v853_v55, %v799_v45 }
 0x226   :  { %v742_v61 = vmul.f32 1.25, %v732_v58  ;;  %v735_v62 = vadd.f32 %v875_v56, %v694_v59 }
 0x228   :  { %v743_v63 = vmul.f32 1.25, %v735_v62  ;;  %v744_v0 = vsel %vm740_vm0, %v742_v61, 0.0 }
 0x229   :  { %746 = vst [vmem:[#allocation10] sm:$0xff] %v744_v0 }
 0x22a   :  { %v745_v1 = vsel %vm741_vm1, %v743_v63, 0.0 }
 0x22b   :  { %747 = vst [vmem:[#allocation10 + $0x8] sm:$0xff] %v745_v1 }
 0x22c   :  { %1067 = shalt.err (!%p1064_p8)
}
 0x22d   :  { %s1068_s9 = scalar_lea.hbm %s1221_s6, 256 }
 0x22e   :  { %p1069_p9 = scmp.ne.s32.totalorder %s1221_s6, %s1068_s9  ;;  %p1072_p10 = scmp.lt.u32.totalorder %s1068_s9, %s1221_s6 }
 0x230   :  { %p1074_p11 = pnand %p1072_p10, %p1069_p9 }
 0x232   :  { %1077 = shalt.err (!%p1074_p11)
}
 0x233   :  { %759 = dma.vmem_to_hbm [thread:$0]  %s754_s30, 256, %s1221_s6, [#allocation4], %s1090_s1, %s1090_s1, %s1091_s21  }
 0x234   :  { %1084 = dma.done.wait [#allocation4], 256  }
 0x235   :  { %1085 = vsyncadd [#allocation4], 4294967040 }
 0x236   :  { %763 = vsyncpa [#allocation3], 1 }
 0x237   :  { %764 = vsyncpa [#allocation6], 1 }
 0x238   :  { %765 = vsyncpa [#allocation9], 1 }
 0x239   :  { %766 = vsyncpa [#allocation4], 1 }

</bundles_post_ra>
